<compile_context>
chip_gen: v7x
topology: tpu7x:2x2x1
jax: 0.10.0
libtpu: 0.0.40
codegen_flags: <defaults>
</compile_context>

<pallas_src>
import functools

import jax
import jax.numpy as jnp
from jax.experimental import pallas as pl
from jax.experimental.pallas import tpu as pltpu

_LANES = 128
_SUB_ROWS = 512  # strip-mine chunk: 512 x 128 f32 = 256 KiB per temporary


def _tpu_tile_config(itemsize: int):
    """Return (block_rows_target, outer_slices) for the current TPU generation."""
    kind = ""
    try:
        kind = jax.devices()[0].device_kind.lower()
    except Exception:
        pass
    if "v7" in kind or "tpu7" in kind:
        rows, outer = 8192, 2           # 2 TensorCores per chip
    elif "v6" in kind:
        rows, outer = 8192, 1           # ~16 MiB double-buffered, fits 32 MiB scoped
    elif "v5 lite" in kind or "v5e" in kind or "v5lite" in kind:
        rows, outer = 2048, 1           # 16 MiB scoped-VMEM default on v5e
    else:
        rows, outer = 4096, 1
    # Keep each grid step at roughly the same number of HBM bytes for narrow dtypes.
    rows *= max(1, 4 // max(1, itemsize))
    return rows, outer


def _chunk_partial(p_ref, t_ref, row_off, n_rows, eps2):
    """(8, 128) partial Charbonnier sum over n_rows (static, multiple of 8) rows."""
    p = p_ref[pl.ds(row_off, n_rows), :].astype(jnp.float32)
    t = t_ref[pl.ds(row_off, n_rows), :].astype(jnp.float32)
    d = p - t
    c = jnp.sqrt(d * d + jnp.float32(eps2))
    # Pure per-lane VPU fold into an (8, 128) partial (no cross-lane XLU work).
    return jnp.sum(c.reshape(n_rows // 8, 8, _LANES), axis=0)


def _strip_sum(p_ref, t_ref, total_rows, sub_rows, eps2):
    """Strip-mined (8, 128) partial sum over the first total_rows rows of the tile."""
    acc = jnp.zeros((8, _LANES), jnp.float32)
    n_full = total_rows // sub_rows
    rem = total_rows % sub_rows          # multiple of 8 by construction
    if n_full == 1:
        acc = acc + _chunk_partial(p_ref, t_ref, 0, sub_rows, eps2)
    elif n_full > 1:
        def body(i, a):
            off = pl.multiple_of(i * sub_rows, sub_rows)
            return a + _chunk_partial(p_ref, t_ref, off, sub_rows, eps2)
        acc = jax.lax.fori_loop(0, n_full, body, acc)
    if rem:
        acc = acc + _chunk_partial(p_ref, t_ref, n_full * sub_rows, rem, eps2)
    return acc


def _charbonnier_kernel(p_ref, t_ref, out_ref, *, eps2, inner, num_tiles,
                        block_rows, sub_rows, last_rows, has_dup):
    s = pl.program_id(0)   # parallel slice axis (v7x TensorCores)
    k = pl.program_id(1)   # sequential reduction axis
    tile_idx = s * inner + k

    @pl.when(k == 0)
    def _init():
        out_ref[...] = jnp.zeros_like(out_ref)

    if last_rows != block_rows:
        # Statically-known partial last tile: read only its valid rows;
        # full tiles take the unmasked path. Duplicate tiles fall through both.
        @pl.when(tile_idx == num_tiles - 1)
        def _last():
            out_ref[...] += _strip_sum(p_ref, t_ref, last_rows, sub_rows, eps2)

        @pl.when(tile_idx < num_tiles - 1)
        def _full():
            out_ref[...] += _strip_sum(p_ref, t_ref, block_rows, sub_rows, eps2)
    elif has_dup:
        # All real tiles are full; only skip clamped duplicate tiles.
        @pl.when(tile_idx < num_tiles)
        def _full():
            out_ref[...] += _strip_sum(p_ref, t_ref, block_rows, sub_rows, eps2)
    else:
        out_ref[...] += _strip_sum(p_ref, t_ref, block_rows, sub_rows, eps2)


@functools.partial(jax.jit, static_argnames=("eps",))
def charbonnier_loss(pred, target, eps: float = 1e-6):
    assert pred.shape == target.shape
    n_elem = pred.size
    eps2 = float(eps) ** 2

    p_flat = pred.reshape(-1)
    t_flat = target.reshape(-1)

    p2d = t2d = None
    if n_elem % _LANES == 0:
        # Zero-copy path: reshape of a contiguous flat array is free.
        m = n_elem // _LANES
        m_main = (m // 8) * 8            # rows handled by the kernel
        if m_main:
            p2d = p_flat.reshape(m, _LANES)
            t2d = t_flat.reshape(m, _LANES)
    else:
        # TODO(synk): for element counts not divisible by 128 this prefix slice
        # may materialize a copy in HBM; rare for image tensors, and still
        # cheaper than the old jnp.pad path (no zero-fill write, no masking).
        n_main = (n_elem // (8 * _LANES)) * (8 * _LANES)
        m_main = n_main // _LANES
        if m_main:
            p2d = p_flat[:n_main].reshape(m_main, _LANES)
            t2d = t_flat[:n_main].reshape(m_main, _LANES)

    n_main = m_main * _LANES
    # Tiny (<1024-element + lane remainder) tail in plain JAX.
    if n_main < n_elem:
        td = (p_flat[n_main:].astype(jnp.float32)
              - t_flat[n_main:].astype(jnp.float32))
        tail_sum = jnp.sum(jnp.sqrt(td * td + jnp.float32(eps2)))
    else:
        tail_sum = jnp.float32(0.0)

    if m_main == 0:
        return tail_sum / jnp.float32(n_elem)

    rows_target, outer_target = _tpu_tile_config(jnp.dtype(pred.dtype).itemsize)
    block_rows = min(rows_target, m_main)                 # multiple of 8
    num_tiles = pl.cdiv(m_main, block_rows)
    last_rows = m_main - (num_tiles - 1) * block_rows     # multiple of 8
    outer = outer_target if num_tiles >= 2 else 1
    inner = pl.cdiv(num_tiles, outer)
    sub_rows = min(_SUB_ROWS, block_rows)
    has_dup = outer * inner > num_tiles

    kernel = functools.partial(
        _charbonnier_kernel,
        eps2=eps2, inner=inner, num_tiles=num_tiles, block_rows=block_rows,
        sub_rows=sub_rows, last_rows=last_rows, has_dup=has_dup)

    # Clamp the tile index so over-coverage (outer * inner > num_tiles) fetches
    # a harmless duplicate of the last tile, which the kernel skips.
    in_spec = pl.BlockSpec(
        (block_rows, _LANES),
        lambda s, k: (jnp.minimum(s * inner + k, num_tiles - 1), 0))
    out_spec = pl.BlockSpec((8, _LANES), lambda s, k: (s, 0))

    partials = pl.pallas_call(
        kernel,
        grid=(outer, inner),
        in_specs=[in_spec, in_spec],
        out_specs=out_spec,
        out_shape=jax.ShapeDtypeStruct((outer * 8, _LANES), jnp.float32),
        compiler_params=pltpu.CompilerParams(
            dimension_semantics=("parallel", "arbitrary")),
    )(p2d, t2d)

    # Final tiny cross-lane reduction + mean in plain JAX.
    return (jnp.sum(partials) + tail_sum) / jnp.float32(n_elem)


def _reference(pred, target, eps=1e-6):
    d = pred.astype(jnp.float32) - target.astype(jnp.float32)
    return jnp.mean(jnp.sqrt(d * d + eps * eps))


if __name__ == "__main__":
    key = jax.random.PRNGKey(0)
    k1, k2 = jax.random.split(key)
    shape = (2, 4, 16, 16)  # NCHW: batch=2, channels=4, spatial=16
    pred = jax.random.normal(k1, shape, dtype=jnp.float32)
    target = jax.random.normal(k2, shape, dtype=jnp.float32)

    out = charbonnier_loss(pred, target, eps=1e-6)
    out = jax.block_until_ready(out)

    ref = _reference(pred, target, eps=1e-6)
    assert jnp.allclose(out, ref, rtol=1e-5, atol=1e-6), (out, ref)
    print("KERNEL_OK")
</pallas_src>

<mosaic_0001>
module attributes {stable_mosaic.version = 11 : i64} {
  func.func @_charbonnier_kernel(%arg0: i32, %arg1: i32, %arg2: memref<16x128xf32, #tpu.memory_space<vmem>>, %arg3: memref<16x128xf32, #tpu.memory_space<vmem>>, %arg4: memref<8x128xf32, #tpu.memory_space<vmem>>) attributes {dimension_semantics = [#tpu.dimension_semantics<parallel>, #tpu.dimension_semantics<arbitrary>], iteration_bounds = array<i64: 1, 1>, scalar_prefetch = 0 : i64, scratch_operands = 0 : i64, tpu.core_type = #tpu.core_type<tc>, window_params = [{transform_indices = @transform_0, window_bounds = array<i64: 16, 128>}, {transform_indices = @transform_1, window_bounds = array<i64: 16, 128>}, {transform_indices = @transform_2, window_bounds = array<i64: 8, 128>}]} {
    %c0_i32 = arith.constant 0 : i32
    %0 = arith.cmpi eq, %arg1, %c0_i32 : i32
    %1 = arith.extui %0 : i1 to i32
    %c0_i32_0 = arith.constant 0 : i32
    %2 = arith.cmpi ne, %1, %c0_i32_0 : i32
    scf.if %2 {
      %cst_10 = arith.constant 0.000000e+00 : f32
      %17 = vector.broadcast %cst_10 : f32 to vector<8x128xf32>
      %c0_11 = arith.constant 0 : index
      %c0_12 = arith.constant 0 : index
      %18 = vector.load %arg4[%c0_11, %c0_12] : memref<8x128xf32, #tpu.memory_space<vmem>>, vector<8x128xf32>
      tpu.vector_store %arg4[%c0_11, %c0_12], %17 {strides = array<i32>} : memref<8x128xf32, #tpu.memory_space<vmem>>, vector<8x128xf32>,
    } else {
    }
    %c0 = arith.constant 0 : index
    %c0_1 = arith.constant 0 : index
    %3 = vector.load %arg4[%c0, %c0_1] : memref<8x128xf32, #tpu.memory_space<vmem>>, vector<8x128xf32>
    %cst = arith.constant 0.000000e+00 : f32
    %4 = vector.broadcast %cst : f32 to vector<8x128xf32>
    %c0_2 = arith.constant 0 : index
    %c0_3 = arith.constant 0 : index
    %5 = vector.load %arg2[%c0_2, %c0_3] : memref<16x128xf32, #tpu.memory_space<vmem>>, vector<16x128xf32>
    %c0_4 = arith.constant 0 : index
    %c0_5 = arith.constant 0 : index
    %6 = vector.load %arg3[%c0_4, %c0_5] : memref<16x128xf32, #tpu.memory_space<vmem>>, vector<16x128xf32>
    %7 = arith.subf %5, %6 : vector<16x128xf32>
    %8 = arith.mulf %7, %7 : vector<16x128xf32>
    %cst_6 = arith.constant 9.99999996E-13 : f32
    %9 = vector.broadcast %cst_6 : f32 to vector<16x128xf32>
    %10 = arith.addf %8, %9 : vector<16x128xf32>
    %11 = math.sqrt %10 : vector<16x128xf32>
    %12 = vector.shape_cast %11 : vector<16x128xf32> to vector<2x8x128xf32>
    %cst_7 = arith.constant dense<0.000000e+00> : vector<8x128xf32>
    %13 = vector.multi_reduction <add>, %12, %cst_7 [0] : vector<2x8x128xf32> to vector<8x128xf32>
    %14 = arith.addf %4, %13 : vector<8x128xf32>
    %15 = arith.addf %3, %14 : vector<8x128xf32>
    %c0_8 = arith.constant 0 : index
    %c0_9 = arith.constant 0 : index
    %16 = vector.load %arg4[%c0_8, %c0_9] : memref<8x128xf32, #tpu.memory_space<vmem>>, vector<8x128xf32>
    tpu.vector_store %arg4[%c0_8, %c0_9], %15 {strides = array<i32>} : memref<8x128xf32, #tpu.memory_space<vmem>>, vector<8x128xf32>,
    return
  }
  func.func @transform_0(%arg0: i32, %arg1: i32) -> (i32, i32) {
    %c1_i32 = arith.constant 1 : i32
    %0 = arith.muli %arg0, %c1_i32 : i32
    %1 = arith.addi %0, %arg1 : i32
    %c0_i32 = arith.constant 0 : i32
    %2 = arith.minsi %1, %c0_i32 : i32
    %c0_i32_0 = arith.constant 0 : i32
    %c0_i32_1 = arith.constant 0 : i32
    return %2, %c0_i32_0 : i32, i32
  }
  func.func @transform_1(%arg0: i32, %arg1: i32) -> (i32, i32) {
    %c1_i32 = arith.constant 1 : i32
    %0 = arith.muli %arg0, %c1_i32 : i32
    %1 = arith.addi %0, %arg1 : i32
    %c0_i32 = arith.constant 0 : i32
    %2 = arith.minsi %1, %c0_i32 : i32
    %c0_i32_0 = arith.constant 0 : i32
    %c0_i32_1 = arith.constant 0 : i32
    return %2, %c0_i32_0 : i32, i32
  }
  func.func @transform_2(%arg0: i32, %arg1: i32) -> (i32, i32) {
    %c0_i32 = arith.constant 0 : i32
    %c0_i32_0 = arith.constant 0 : i32
    return %arg0, %c0_i32 : i32, i32
  }
}

</mosaic_0001>

<bundles_post_ra>
// kernel: charbonnier_loss.1
= control target key start
LH: loop header
LB: loop body
LE: loop exit
PB: predicated region body
PF: predicated region fallthrough
CT: control target
= control target key end

     0   :  { %s160_s0 = inlined_call_operand.vmem [shape: f32[16,128], index: 0, kind: input, shape index: {}]   ;;  %s161_s1 = inlined_call_operand.vmem [shape: f32[16,128], index: 1, kind: input, shape index: {}]   ;;  %s162_s2 = inlined_call_operand.vmem [shape: f32[8,128], index: 2, kind: output, shape index: {}]  }
   0x1   :  { %v81_v0 = vld [vmem:[%s160_s0] sm:$0xff]  ;;  %v82_v1 = vld [vmem:[%s160_s0 + $0x8] sm:$0xff] }
   0x2   :  { %v83_v2 = vld [vmem:[%s161_s1] sm:$0xff]  ;;  %v84_v3 = vld [vmem:[%s161_s1 + $0x8] sm:$0xff] }
   0x3   :  { %v85_v4 = vsub.f32 %v81_v0, %v83_v2  ;;  %v86_v5 = vsub.f32 %v82_v1, %v84_v3 }
   0x5   :  { %v87_v6 = vmul.f32 %v85_v4, %v85_v4  ;;  %v88_v7 = vmul.f32 %v86_v5, %v86_v5 }
   0x7   :  { %v89_v8 = vadd.f32 1e-12, %v87_v6  ;;  %v90_v9 = vadd.f32 1e-12, %v88_v7 }
   0x9   :  { %126 = vrsqrt.f32 %v89_v8  ;;  %vm93_vm0 = vcmp.eq.f32.partialorder %v89_v8, inf  ;;  %v96_v11 = vand.u32 2147483648, %v89_v8  ;;  %vm95_vm1 = vcmp.eq.f32.partialorder %v89_v8, 0.0 }
   0xa   :  { %128 = vrsqrt.f32 %v90_v9  ;;  %vm100_vm2 = vcmp.eq.f32.partialorder %v90_v9, inf  ;;  %v103_v14 = vand.u32 2147483648, %v90_v9  ;;  %vm102_vm3 = vcmp.eq.f32.partialorder %v90_v9, 0.0 }
  0x13   :  { %v127_v10 = vpop.eup %126 }
  0x14   :  { %v129_v12 = vpop.eup %128  ;;  %v92_v13 = vmul.f32 %v127_v10, %v89_v8 }
  0x15   :  { %v99_v15 = vmul.f32 %v129_v12, %v90_v9 }
  0x16   :  { %v94_v16 = vsel %vm93_vm0, %v89_v8, %v92_v13 }
  0x17   :  { %v97_v17 = vsel %vm95_vm1, %v96_v11, %v94_v16  ;;  %v101_v18 = vsel %vm100_vm2, %v90_v9, %v99_v15 }
  0x18   :  { %v104_v19 = vsel %vm102_vm3, %v103_v14, %v101_v18 }
  0x19   :  { %v105_v20 = vadd.f32 %v104_v19, %v97_v17 }
  0x1b   :  { %108 = vst [vmem:[%s162_s2] sm:$0xff] %v105_v20 }

</bundles_post_ra>
